<compile_context>
chip_gen: v5e
topology: v5e:2x2
jax: 0.10.0
libtpu: 0.0.40
codegen_flags: <defaults>
</compile_context>

<pallas_src>
import jax
import jax.numpy as jnp
from jax.experimental import pallas as pl
from jax.experimental.pallas import tpu as pltpu


def linear_sub_kernel(x1_ref, wt_ref, bias_ref, x2_ref, o_ref):
    # Grid-less, single invocation: every operand is a whole-array block, so
    # there is no software-pipeline prologue/epilogue or double-buffer DMA.
    #
    # The (1,3)x(3,4) contraction is 24 FLOPs — keep it OFF the MXU (padding to
    # a 128/256-wide systolic tile + MRF/MRB pop costs far more than 3 FMAs)
    # and do statically-unrolled scalar×vector VALU FMAs instead.
    #
    # x1 lives in SMEM: each element is read as an sreg scalar, so the
    # multiplier comes from the scalar slot and no per-iteration lane
    # broadcast / splat of a single vreg element is needed.
    B, _ = o_ref.shape
    in_features = wt_ref.shape[0]
    bias = bias_ref[...]                                  # (1, OUT)
    for b in range(B):                                    # static unroll (B is tiny)
        acc = bias - x2_ref[b:b + 1, :]                   # fold bias - x2 in-kernel
        for k in range(in_features):                      # static unroll, VPU-only FMAs
            acc = acc + x1_ref[b, k] * wt_ref[k:k + 1, :]
        o_ref[b:b + 1, :] = acc.astype(o_ref.dtype)


def make_linear_sub(weight, bias):
    """One-time parameter prep (never on the per-call path):
       - transpose weight to (IN, OUT) so the kernel never relayouts,
       - reshape bias to (1, OUT)."""
    wt = jnp.asarray(weight).T                            # (IN, OUT)
    bias2d = jnp.asarray(bias).reshape(1, -1)             # (1, OUT)
    out_features = wt.shape[1]

    # TODO(synk): if this op is ever run at realistic batch sizes, stack B>=256
    # rows, pad OUT to a multiple of 128 (lane-dense unmasked vst), add a grid
    # with the batch axis marked "parallel" so v7x can shard across its two
    # TensorCores, and size tiles against 64 MiB VMEM (v7x) with
    # double-buffering (set vmem_limit_bytes explicitly if needed).
    @jax.jit
    def fwd(x1, x2):
        B = x1.shape[0]
        return pl.pallas_call(
            linear_sub_kernel,
            out_shape=jax.ShapeDtypeStruct((B, out_features), x1.dtype),
            in_specs=[
                pl.BlockSpec(memory_space=pltpu.MemorySpace.SMEM),   # x1 (scalars)
                pl.BlockSpec(memory_space=pltpu.MemorySpace.VMEM),   # weight.T
                pl.BlockSpec(memory_space=pltpu.MemorySpace.VMEM),   # bias
                pl.BlockSpec(memory_space=pltpu.MemorySpace.VMEM),   # x2
            ],
            out_specs=pl.BlockSpec(memory_space=pltpu.MemorySpace.VMEM),
            # cost_estimate intentionally omitted: at this size a hand-written
            # logical-byte count is misleading (real traffic is padded tiles).
        )(x1, wt, bias2d, x2)

    return fwd


if __name__ == "__main__":
    key = jax.random.PRNGKey(0)
    k_x1, k_x2, k_w, k_b = jax.random.split(key, 4)

    IN_FEATURES, OUT_FEATURES = 3, 4
    B = 1

    # Inputs (mirroring torch.randn(1, 3) and torch.randn(1, 4))
    x1 = jax.random.normal(k_x1, (B, IN_FEATURES), dtype=jnp.float32)
    x2 = jax.random.normal(k_x2, (B, OUT_FEATURES), dtype=jnp.float32)

    # Deterministic parameter init mimicking torch.nn.Linear default
    # (uniform in [-1/sqrt(fan_in), 1/sqrt(fan_in)])
    bound = 1.0 / jnp.sqrt(jnp.float32(IN_FEATURES))
    weight = jax.random.uniform(
        k_w, (OUT_FEATURES, IN_FEATURES), dtype=jnp.float32,
        minval=-bound, maxval=bound)
    bias = jax.random.uniform(
        k_b, (OUT_FEATURES,), dtype=jnp.float32, minval=-bound, maxval=bound)

    fwd = make_linear_sub(weight, bias)     # param prep + jit happen once here
    out = jax.block_until_ready(fwd(x1, x2))

    # Reference check in plain JAX (full f32 path, no MXU involved)
    ref = x1 @ weight.T + bias - x2
    assert jnp.allclose(out, ref, atol=1e-5, rtol=1e-5), (out, ref)

    print("KERNEL_OK")
</pallas_src>

<mosaic_0001>
module attributes {stable_mosaic.version = 11 : i64} {
  func.func @linear_sub_kernel(%arg0: memref<1x3xf32, #tpu.memory_space<smem>>, %arg1: memref<3x4xf32, #tpu.memory_space<vmem>>, %arg2: memref<1x4xf32, #tpu.memory_space<vmem>>, %arg3: memref<1x4xf32, #tpu.memory_space<vmem>>, %arg4: memref<1x4xf32, #tpu.memory_space<vmem>>) attributes {dimension_semantics = [], scalar_prefetch = 0 : i64, scratch_operands = 0 : i64, tpu.core_type = #tpu.core_type<tc>} {
    %c0 = arith.constant 0 : index
    %c0_0 = arith.constant 0 : index
    %0 = vector.load %arg2[%c0, %c0_0] : memref<1x4xf32, #tpu.memory_space<vmem>>, vector<1x4xf32>
    %c0_1 = arith.constant 0 : index
    %c0_2 = arith.constant 0 : index
    %1 = vector.load %arg3[%c0_1, %c0_2] : memref<1x4xf32, #tpu.memory_space<vmem>>, vector<1x4xf32>
    %2 = arith.subf %0, %1 : vector<1x4xf32>
    %c0_3 = arith.constant 0 : index
    %c0_4 = arith.constant 0 : index
    %3 = memref.load %arg0[%c0_3, %c0_4] : memref<1x3xf32, #tpu.memory_space<smem>>
    %c0_5 = arith.constant 0 : index
    %c0_6 = arith.constant 0 : index
    %4 = vector.load %arg1[%c0_5, %c0_6] : memref<3x4xf32, #tpu.memory_space<vmem>>, vector<1x4xf32>
    %5 = vector.broadcast %3 : f32 to vector<1x4xf32>
    %6 = arith.mulf %5, %4 : vector<1x4xf32>
    %7 = arith.addf %2, %6 : vector<1x4xf32>
    %c0_7 = arith.constant 0 : index
    %c1 = arith.constant 1 : index
    %8 = memref.load %arg0[%c0_7, %c1] : memref<1x3xf32, #tpu.memory_space<smem>>
    %c1_8 = arith.constant 1 : index
    %c0_9 = arith.constant 0 : index
    %9 = vector.load %arg1[%c1_8, %c0_9] : memref<3x4xf32, #tpu.memory_space<vmem>>, vector<1x4xf32>
    %10 = vector.broadcast %8 : f32 to vector<1x4xf32>
    %11 = arith.mulf %10, %9 : vector<1x4xf32>
    %12 = arith.addf %7, %11 : vector<1x4xf32>
    %c0_10 = arith.constant 0 : index
    %c2 = arith.constant 2 : index
    %13 = memref.load %arg0[%c0_10, %c2] : memref<1x3xf32, #tpu.memory_space<smem>>
    %c2_11 = arith.constant 2 : index
    %c0_12 = arith.constant 0 : index
    %14 = vector.load %arg1[%c2_11, %c0_12] : memref<3x4xf32, #tpu.memory_space<vmem>>, vector<1x4xf32>
    %15 = vector.broadcast %13 : f32 to vector<1x4xf32>
    %16 = arith.mulf %15, %14 : vector<1x4xf32>
    %17 = arith.addf %12, %16 : vector<1x4xf32>
    %c0_13 = arith.constant 0 : index
    %c0_14 = arith.constant 0 : index
    %18 = vector.load %arg4[%c0_13, %c0_14] : memref<1x4xf32, #tpu.memory_space<vmem>>, vector<1x4xf32>
    tpu.vector_store %arg4[%c0_13, %c0_14], %17 {strides = array<i32>} : memref<1x4xf32, #tpu.memory_space<vmem>>, vector<1x4xf32>,
    return
  }
}

</mosaic_0001>

<bundles_post_ra>
// kernel: fwd.1
= control target key start
LH: loop header
LB: loop body
LE: loop exit
PB: predicated region body
PF: predicated region fallthrough
CT: control target
= control target key end

     0   :  { %9 = vsyncpa [#allocation5], 0  ;;  %s240_s0 = inlined_call_operand.hbm [shape: f32[1,3], index: 0, kind: input, shape index: {}]   ;;  %s241_s1 = inlined_call_operand.hbm [shape: f32[3,4], index: 1, kind: input, shape index: {}]   ;;  %s242_s2 = inlined_call_operand.vmem [shape: f32[1,4], index: 2, kind: input, shape index: {}]   ;;  %s243_s3 = inlined_call_operand.hbm [shape: f32[1,4], index: 3, kind: input, shape index: {}]   ;;  %s244_s4 = inlined_call_operand.hbm [shape: f32[1,4], index: 4, kind: output, shape index: {}]  }
   0x1   :  { %10 = vsyncpa [#allocation3], 0 }
   0x2   :  { %11 = vsyncpa [#allocation8], 0 }
   0x3   :  { %12 = vsyncpa [#allocation4], 0  ;;  %s18_s17 = sshll.u32 %s240_s0, 4  ;;  %s27_s20 = sshll.u32 %s241_s1, 4  ;;  %s19_s17 = int_to_ptr.hbm [resolvable:$true] %s18_s17  ;;  %s28_s20 = int_to_ptr.hbm [resolvable:$true] %s27_s20 }
   0x4   :  { %s196_s21 = smov [#allocation2]   ;;  %s197_s22 = smov [#allocation6]  }
   0x5   :  { %21 = dma.hbm_to_smem %s19_s17, 16, %s196_s21, [#allocation5]  }
   0x6   :  { %s29_s23 = sshll.u32 %s197_s22, 4  ;;  %s40_s26 = sshll.u32 %s243_s3, 4  ;;  %s30_s23 = int_to_ptr.vmem [resolvable:$true] %s29_s23  ;;  %s41_s26 = int_to_ptr.hbm [resolvable:$true] %s40_s26 }
   0x7   :  { %32 = dma.hbm_to_vmem [thread:$0]  %s28_s20, 64, %s30_s23, [#allocation3]  }
   0x8   :  { %s198_s27 = smov [#allocation7]  }
   0x9   :  { %s42_s28 = sshll.u32 %s198_s27, 4  ;;  %s43_s28 = int_to_ptr.vmem [resolvable:$true] %s42_s28 }
   0xa   :  { %45 = dma.hbm_to_vmem [thread:$0]  %s41_s26, 16, %s43_s28, [#allocation8]  }
   0xb   :  { %188 = dma.done.wait [#allocation5], 16  }
   0xc   :  { %189 = vsyncadd [#allocation5], 4294967280 }
   0xd   :  { %190 = dma.done.wait [#allocation3], 64  }
   0xe   :  { %191 = vsyncadd [#allocation3], 4294967232 }
   0xf   :  { %192 = dma.done.wait [#allocation8], 16  }
  0x10   :  { %193 = vsyncadd [#allocation8], 4294967280 }
  0x11   :  { %58 = sfence }
  0x12   :  { %s62_s0 = sld [smem:[#allocation2]]  ;;  %v59_v0 = vld [vmem:[%s242_s2] sm:$0x1]  ;;  %v60_v1 = vld [vmem:[#allocation7] sm:$0x1]  ;;  %s199_s5 = smov [#allocation9]  }
  0x13   :  { %s98_s1 = sld [smem:[#allocation2 + $0x1]]  ;;  %v63_v2 = vld [vmem:[#allocation6] sm:$0x1]  ;;  %v61_v3 = vsub.f32 %v59_v0, %v60_v1  ;;  %v68_v4 = vld [vmem:[#allocation6 + $0x1] sm:$0x1]  ;;  %s84_s6 = sshll.u32 %s199_s5, 4  ;;  %s85_s6 = int_to_ptr.vmem [resolvable:$true] %s84_s6 }
  0x14   :  { %s99_s3 = sld [smem:[#allocation2 + $0x2]]  ;;  %v73_v6 = vld [vmem:[#allocation6 + $0x2] sm:$0x1]  ;;  %s86_s9 = sshll.u32 %s244_s4, 4  ;;  %vm77_vm0 = vcmask 24576   ;;  %s87_s9 = int_to_ptr.hbm [resolvable:$true] %s86_s9 }
  0x18   :  { %v64_v5 = vstv %s62_s0 }
  0x19   :  { %v65_v7 = vmul.f32 %v64_v5, %v63_v2  ;;  %v69_v8 = vstv %s98_s1 }
  0x1a   :  { %v70_v9 = vmul.f32 %v69_v8, %v68_v4  ;;  %v74_v10 = vstv %s99_s3 }
  0x1b   :  { %v66_v11 = vadd.f32 %v65_v7, %v61_v3  ;;  %v75_v12 = vmul.f32 %v74_v10, %v73_v6 }
  0x1d   :  { %v71_v13 = vadd.f32 %v70_v9, %v66_v11 }
  0x1f   :  { %v76_v14 = vadd.f32 %v75_v12, %v71_v13 }
  0x21   :  { %78 = vst.msk [vmem:[#allocation9] sm:$0x1] %vm77_vm0, %v76_v14 }
  0x22   :  { %89 = dma.vmem_to_hbm [thread:$0]  %s85_s6, 16, %s87_s9, [#allocation4]  }
  0x23   :  { %194 = dma.done.wait [#allocation4], 16  }
  0x24   :  { %195 = vsyncadd [#allocation4], 4294967280 }
  0x25   :  { %94 = vsyncpa [#allocation3], 1 }
  0x26   :  { %95 = vsyncpa [#allocation8], 1 }
  0x27   :  { %96 = vsyncpa [#allocation4], 1 }
  0x28   :  { %97 = vsyncpa [#allocation5], 1 }

</bundles_post_ra>
